<compile_context>
chip_gen: v6e
topology: v6e:2x2x1
jax: 0.10.0
libtpu: 0.0.40
codegen_flags: <defaults>
</compile_context>

<pallas_src>
import functools

import jax
import jax.numpy as jnp
from jax.experimental import pallas as pl
from jax.experimental.pallas import tpu as pltpu


def _make_conv_bn_mish_kernel(*, K, padding, H, W, Cin, Cout, mish):
    """Fused KxK conv (stride-1 dense) + folded BN + optional Mish, one image/step.

    Kernel refs:
      x_ref:     (1, Cin, H*W)      unpadded image, channels-major, flat spatial
      w_ref:     (K, K, Cout, Cin)  conv weights
      scale_ref: (Cout, 1)          folded BN scale  (per-sublane scalar)
      bias_ref:  (Cout, 1)          folded BN bias   (includes conv bias)
      o_ref:     (1, Cout, M)       dense stride-1 output, flat-spatial width Wp
      xflat_ref: (Cin, Lp)          VMEM scratch: zero-padded flattened image
    """
    Hp, Wp = H + 2 * padding, W + 2 * padding
    Hd = Hp - K + 1            # dense (stride-1) output rows
    M = Hd * Wp                # dense flat output length (lane dimension)
    Lp = Hp * Wp + (K - 1)     # flat padded-input length (covers max shift)

    def kernel(x_ref, w_ref, scale_ref, bias_ref, o_ref, xflat_ref):
        # 1) In-kernel zero padding: write each image row into the flat scratch.
        if padding > 0 or K > 1:
            xflat_ref[...] = jnp.zeros_like(xflat_ref)
        for y in range(H):
            dst = (y + padding) * Wp + padding
            xflat_ref[:, dst:dst + W] = x_ref[0, :, y * W:(y + 1) * W]

        # 2) KxK conv as K*K lane-shifted, lane-dense MXU matmuls (f32 accumulate).
        acc = jnp.zeros((Cout, M), jnp.float32)
        for ky in range(K):
            for kx in range(K):
                shift = ky * Wp + kx
                xs = xflat_ref[:, shift:shift + M]               # (Cin, M)
                acc = acc + jnp.dot(w_ref[ky, kx], xs,
                                    preferred_element_type=jnp.float32)

        # 3) Folded BN (per-sublane scale/bias) + Mish epilogue, all f32.
        yv = acc * scale_ref[...] + bias_ref[...]
        if mish:
            # mish(x) = x * tanh(softplus(x)); stable softplus.
            sp = jnp.maximum(yv, 0.0) + jnp.log(1.0 + jnp.exp(-jnp.abs(yv)))
            yv = yv * jnp.tanh(sp)

        o_ref[...] = yv.reshape(1, Cout, M).astype(o_ref.dtype)

    return kernel, M, Lp


@functools.partial(
    jax.jit, static_argnames=("kernel_size", "stride", "padding", "mish"))
def base_conv_forward(x, w_kkoc, scale, bias, *,
                      kernel_size, stride=1, padding=0, mish=True):
    """baseConv forward: Conv2d(K,stride,padding) -> BN(eval) -> [Mish]. NCHW."""
    N, Cin, H, W = x.shape
    K = kernel_size
    Cout = w_kkoc.shape[2]
    Hp, Wp = H + 2 * padding, W + 2 * padding
    Ho = (Hp - K) // stride + 1
    Wo = (Wp - K) // stride + 1

    kernel, M, Lp = _make_conv_bn_mish_kernel(
        K=K, padding=padding, H=H, W=W, Cin=Cin, Cout=Cout, mish=mish)

    x_flat = x.reshape(N, Cin, H * W)   # free reshape: NCHW spatial is contiguous

    dense = pl.pallas_call(
        kernel,
        out_shape=jax.ShapeDtypeStruct((N, Cout, M), x.dtype),
        grid=(N,),
        in_specs=[
            pl.BlockSpec((1, Cin, H * W), lambda n: (n, 0, 0)),
            pl.BlockSpec((K, K, Cout, Cin), lambda n: (0, 0, 0, 0)),
            pl.BlockSpec((Cout, 1), lambda n: (0, 0)),
            pl.BlockSpec((Cout, 1), lambda n: (0, 0)),
        ],
        out_specs=pl.BlockSpec((1, Cout, M), lambda n: (n, 0, 0)),
        scratch_shapes=[pltpu.VMEM((Cin, Lp), jnp.float32)],
        compiler_params=pltpu.CompilerParams(
            dimension_semantics=("parallel",)),
    )(x_flat, w_kkoc, scale, bias)

    # Dense stride-1 map -> (N, Cout, Hd, Wp); subsample / crop to the true output.
    # TODO(synk): for stride > 1 the kernel computes the full stride-1 map and the
    #             wrapper subsamples (s^2 extra work); fine for stride 1 (tested).
    dense = dense.reshape(N, Cout, Hp - K + 1, Wp)
    return dense[:, :, ::stride, ::stride][:, :, :Ho, :Wo]


# ----------------------------- parameters / reference -----------------------------

def init_base_conv_params(key, in_channels, out_channels, kernel_size):
    """Deterministic synthetic Conv2d + BatchNorm2d (eval-mode stats) params."""
    kw, kb, kg, kbeta, km, kv = jax.random.split(key, 6)
    fan_in = in_channels * kernel_size * kernel_size
    w = jax.random.normal(
        kw, (out_channels, in_channels, kernel_size, kernel_size),
        jnp.float32) / jnp.sqrt(fan_in)
    conv_b = 0.05 * jax.random.normal(kb, (out_channels,), jnp.float32)
    gamma = 1.0 + 0.1 * jax.random.normal(kg, (out_channels,), jnp.float32)
    beta = 0.1 * jax.random.normal(kbeta, (out_channels,), jnp.float32)
    mean = 0.1 * jax.random.normal(km, (out_channels,), jnp.float32)
    var = jnp.abs(1.0 + 0.1 * jax.random.normal(kv, (out_channels,), jnp.float32))
    return {"w": w, "conv_b": conv_b, "gamma": gamma, "beta": beta,
            "running_mean": mean, "running_var": var}


def fold_bn_params(p, eps=1e-5):
    """Fold eval-mode BN + conv bias into per-channel scale/bias; reorder weights."""
    scale = p["gamma"] / jnp.sqrt(p["running_var"] + eps)
    bias = (p["conv_b"] - p["running_mean"]) * scale + p["beta"]
    w_kkoc = jnp.transpose(p["w"], (2, 3, 0, 1))      # (Cout,Cin,K,K) -> (K,K,Cout,Cin)
    cout = scale.shape[0]
    return w_kkoc, scale.reshape(cout, 1), bias.reshape(cout, 1)


def base_conv_reference(x, p, *, stride, padding, mish, eps=1e-5):
    """Pure-JAX reference matching the PyTorch module (eval-mode BN)."""
    y = jax.lax.conv_general_dilated(
        x, p["w"], window_strides=(stride, stride),
        padding=[(padding, padding), (padding, padding)],
        dimension_numbers=("NCHW", "OIHW", "NCHW"))
    y = y + p["conv_b"][None, :, None, None]
    scale = (p["gamma"] / jnp.sqrt(p["running_var"] + eps))[None, :, None, None]
    y = (y - p["running_mean"][None, :, None, None]) * scale \
        + p["beta"][None, :, None, None]
    if mish:
        y = y * jnp.tanh(jax.nn.softplus(y))
    return y


if __name__ == "__main__":
    key = jax.random.PRNGKey(0)
    k_x, k_p1, k_p2 = jax.random.split(key, 3)

    N, Cin, H, W = 2, 4, 16, 16
    Cout = 8
    x = jax.random.normal(k_x, (N, Cin, H, W), jnp.float32)

    # Case 1: 3x3, stride 1, padding 1, Mish (the default baseConv flavour).
    p1 = init_base_conv_params(k_p1, Cin, Cout, 3)
    w1, s1, b1 = fold_bn_params(p1)
    y1 = base_conv_forward(x, w1, s1, b1,
                           kernel_size=3, stride=1, padding=1, mish=True)
    jax.block_until_ready(y1)
    ref1 = base_conv_reference(x, p1, stride=1, padding=1, mish=True)
    assert y1.shape == (N, Cout, H, W), y1.shape
    assert jnp.all(jnp.isfinite(y1))
    assert jnp.allclose(y1, ref1, atol=2e-2, rtol=2e-2), \
        float(jnp.max(jnp.abs(y1 - ref1)))

    # Case 2: 1x1, stride 1, padding 0, no activation (mish=False branch).
    p2 = init_base_conv_params(k_p2, Cin, Cout, 1)
    w2, s2, b2 = fold_bn_params(p2)
    y2 = base_conv_forward(x, w2, s2, b2,
                           kernel_size=1, stride=1, padding=0, mish=False)
    jax.block_until_ready(y2)
    ref2 = base_conv_reference(x, p2, stride=1, padding=0, mish=False)
    assert y2.shape == (N, Cout, H, W), y2.shape
    assert jnp.all(jnp.isfinite(y2))
    assert jnp.allclose(y2, ref2, atol=2e-2, rtol=2e-2), \
        float(jnp.max(jnp.abs(y2 - ref2)))

    print("KERNEL_OK")
</pallas_src>

<mosaic_0001>
module attributes {stable_mosaic.version = 11 : i64} {
  func.func @kernel(%arg0: i32, %arg1: memref<1x4x256xf32, #tpu.memory_space<vmem>>, %arg2: memref<3x3x8x4xf32, #tpu.memory_space<vmem>>, %arg3: memref<8x1xf32, #tpu.memory_space<vmem>>, %arg4: memref<8x1xf32, #tpu.memory_space<vmem>>, %arg5: memref<1x8x288xf32, #tpu.memory_space<vmem>>, %arg6: memref<4x326xf32, #tpu.memory_space<vmem>>) attributes {dimension_semantics = [#tpu.dimension_semantics<parallel>], iteration_bounds = array<i64: 2>, scalar_prefetch = 0 : i64, scratch_operands = 1 : i64, tpu.core_type = #tpu.core_type<tc>, window_params = [{transform_indices = @transform_0, window_bounds = array<i64: 1, 4, 256>}, {pipeline_mode = #tpu.pipeline_mode<synchronous>, transform_indices = @transform_1, window_bounds = array<i64: 3, 3, 8, 4>}, {pipeline_mode = #tpu.pipeline_mode<synchronous>, transform_indices = @transform_2, window_bounds = array<i64: 8, 1>}, {pipeline_mode = #tpu.pipeline_mode<synchronous>, transform_indices = @transform_3, window_bounds = array<i64: 8, 1>}, {transform_indices = @transform_4, window_bounds = array<i64: 1, 8, 288>}]} {
    %cst = arith.constant 0.000000e+00 : f32
    %0 = vector.broadcast %cst : f32 to vector<4x326xf32>
    %c0 = arith.constant 0 : index
    %c0_0 = arith.constant 0 : index
    %1 = vector.load %arg6[%c0, %c0_0] : memref<4x326xf32, #tpu.memory_space<vmem>>, vector<4x326xf32>
    tpu.vector_store %arg6[%c0, %c0_0], %0 {strides = array<i32>} : memref<4x326xf32, #tpu.memory_space<vmem>>, vector<4x326xf32>,
    %c0_1 = arith.constant 0 : index
    %c0_2 = arith.constant 0 : index
    %c0_3 = arith.constant 0 : index
    %2 = vector.load %arg1[%c0_1, %c0_2, %c0_3] : memref<1x4x256xf32, #tpu.memory_space<vmem>>, vector<1x4x16xf32>
    %3 = vector.shape_cast %2 : vector<1x4x16xf32> to vector<4x16xf32>
    %c0_4 = arith.constant 0 : index
    %c19 = arith.constant 19 : index
    %4 = vector.load %arg6[%c0_4, %c19] : memref<4x326xf32, #tpu.memory_space<vmem>>, vector<4x16xf32>
    tpu.vector_store %arg6[%c0_4, %c19], %3 {strides = array<i32>} : memref<4x326xf32, #tpu.memory_space<vmem>>, vector<4x16xf32>,
    %c0_5 = arith.constant 0 : index
    %c0_6 = arith.constant 0 : index
    %c16 = arith.constant 16 : index
    %5 = vector.load %arg1[%c0_5, %c0_6, %c16] : memref<1x4x256xf32, #tpu.memory_space<vmem>>, vector<1x4x16xf32>
    %6 = vector.shape_cast %5 : vector<1x4x16xf32> to vector<4x16xf32>
    %c0_7 = arith.constant 0 : index
    %c37 = arith.constant 37 : index
    %7 = vector.load %arg6[%c0_7, %c37] : memref<4x326xf32, #tpu.memory_space<vmem>>, vector<4x16xf32>
    tpu.vector_store %arg6[%c0_7, %c37], %6 {strides = array<i32>} : memref<4x326xf32, #tpu.memory_space<vmem>>, vector<4x16xf32>,
    %c0_8 = arith.constant 0 : index
    %c0_9 = arith.constant 0 : index
    %c32 = arith.constant 32 : index
    %8 = vector.load %arg1[%c0_8, %c0_9, %c32] : memref<1x4x256xf32, #tpu.memory_space<vmem>>, vector<1x4x16xf32>
    %9 = vector.shape_cast %8 : vector<1x4x16xf32> to vector<4x16xf32>
    %c0_10 = arith.constant 0 : index
    %c55 = arith.constant 55 : index
    %10 = vector.load %arg6[%c0_10, %c55] : memref<4x326xf32, #tpu.memory_space<vmem>>, vector<4x16xf32>
    tpu.vector_store %arg6[%c0_10, %c55], %9 {strides = array<i32>} : memref<4x326xf32, #tpu.memory_space<vmem>>, vector<4x16xf32>,
    %c0_11 = arith.constant 0 : index
    %c0_12 = arith.constant 0 : index
    %c48 = arith.constant 48 : index
    %11 = vector.load %arg1[%c0_11, %c0_12, %c48] : memref<1x4x256xf32, #tpu.memory_space<vmem>>, vector<1x4x16xf32>
    %12 = vector.shape_cast %11 : vector<1x4x16xf32> to vector<4x16xf32>
    %c0_13 = arith.constant 0 : index
    %c73 = arith.constant 73 : index
    %13 = vector.load %arg6[%c0_13, %c73] : memref<4x326xf32, #tpu.memory_space<vmem>>, vector<4x16xf32>
    tpu.vector_store %arg6[%c0_13, %c73], %12 {strides = array<i32>} : memref<4x326xf32, #tpu.memory_space<vmem>>, vector<4x16xf32>,
    %c0_14 = arith.constant 0 : index
    %c0_15 = arith.constant 0 : index
    %c64 = arith.constant 64 : index
    %14 = vector.load %arg1[%c0_14, %c0_15, %c64] : memref<1x4x256xf32, #tpu.memory_space<vmem>>, vector<1x4x16xf32>
    %15 = vector.shape_cast %14 : vector<1x4x16xf32> to vector<4x16xf32>
    %c0_16 = arith.constant 0 : index
    %c91 = arith.constant 91 : index
    %16 = vector.load %arg6[%c0_16, %c91] : memref<4x326xf32, #tpu.memory_space<vmem>>, vector<4x16xf32>
    tpu.vector_store %arg6[%c0_16, %c91], %15 {strides = array<i32>} : memref<4x326xf32, #tpu.memory_space<vmem>>, vector<4x16xf32>,
    %c0_17 = arith.constant 0 : index
    %c0_18 = arith.constant 0 : index
    %c80 = arith.constant 80 : index
    %17 = vector.load %arg1[%c0_17, %c0_18, %c80] : memref<1x4x256xf32, #tpu.memory_space<vmem>>, vector<1x4x16xf32>
    %18 = vector.shape_cast %17 : vector<1x4x16xf32> to vector<4x16xf32>
    %c0_19 = arith.constant 0 : index
    %c109 = arith.constant 109 : index
    %19 = vector.load %arg6[%c0_19, %c109] : memref<4x326xf32, #tpu.memory_space<vmem>>, vector<4x16xf32>
    tpu.vector_store %arg6[%c0_19, %c109], %18 {strides = array<i32>} : memref<4x326xf32, #tpu.memory_space<vmem>>, vector<4x16xf32>,
    %c0_20 = arith.constant 0 : index
    %c0_21 = arith.constant 0 : index
    %c96 = arith.constant 96 : index
    %20 = vector.load %arg1[%c0_20, %c0_21, %c96] : memref<1x4x256xf32, #tpu.memory_space<vmem>>, vector<1x4x16xf32>
    %21 = vector.shape_cast %20 : vector<1x4x16xf32> to vector<4x16xf32>
    %c0_22 = arith.constant 0 : index
    %c127 = arith.constant 127 : index
    %22 = vector.load %arg6[%c0_22, %c127] : memref<4x326xf32, #tpu.memory_space<vmem>>, vector<4x16xf32>
    tpu.vector_store %arg6[%c0_22, %c127], %21 {strides = array<i32>} : memref<4x326xf32, #tpu.memory_space<vmem>>, vector<4x16xf32>,
    %c0_23 = arith.constant 0 : index
    %c0_24 = arith.constant 0 : index
    %c112 = arith.constant 112 : index
    %23 = vector.load %arg1[%c0_23, %c0_24, %c112] : memref<1x4x256xf32, #tpu.memory_space<vmem>>, vector<1x4x16xf32>
    %24 = vector.shape_cast %23 : vector<1x4x16xf32> to vector<4x16xf32>
    %c0_25 = arith.constant 0 : index
    %c145 = arith.constant 145 : index
    %25 = vector.load %arg6[%c0_25, %c145] : memref<4x326xf32, #tpu.memory_space<vmem>>, vector<4x16xf32>
    tpu.vector_store %arg6[%c0_25, %c145], %24 {strides = array<i32>} : memref<4x326xf32, #tpu.memory_space<vmem>>, vector<4x16xf32>,
    %c0_26 = arith.constant 0 : index
    %c0_27 = arith.constant 0 : index
    %c128 = arith.constant 128 : index
    %26 = vector.load %arg1[%c0_26, %c0_27, %c128] : memref<1x4x256xf32, #tpu.memory_space<vmem>>, vector<1x4x16xf32>
    %27 = vector.shape_cast %26 : vector<1x4x16xf32> to vector<4x16xf32>
    %c0_28 = arith.constant 0 : index
    %c163 = arith.constant 163 : index
    %28 = vector.load %arg6[%c0_28, %c163] : memref<4x326xf32, #tpu.memory_space<vmem>>, vector<4x16xf32>
    tpu.vector_store %arg6[%c0_28, %c163], %27 {strides = array<i32>} : memref<4x326xf32, #tpu.memory_space<vmem>>, vector<4x16xf32>,
    %c0_29 = arith.constant 0 : index
    %c0_30 = arith.constant 0 : index
    %c144 = arith.constant 144 : index
    %29 = vector.load %arg1[%c0_29, %c0_30, %c144] : memref<1x4x256xf32, #tpu.memory_space<vmem>>, vector<1x4x16xf32>
    %30 = vector.shape_cast %29 : vector<1x4x16xf32> to vector<4x16xf32>
    %c0_31 = arith.constant 0 : index
    %c181 = arith.constant 181 : index
    %31 = vector.load %arg6[%c0_31, %c181] : memref<4x326xf32, #tpu.memory_space<vmem>>, vector<4x16xf32>
    tpu.vector_store %arg6[%c0_31, %c181], %30 {strides = array<i32>} : memref<4x326xf32, #tpu.memory_space<vmem>>, vector<4x16xf32>,
    %c0_32 = arith.constant 0 : index
    %c0_33 = arith.constant 0 : index
    %c160 = arith.constant 160 : index
    %32 = vector.load %arg1[%c0_32, %c0_33, %c160] : memref<1x4x256xf32, #tpu.memory_space<vmem>>, vector<1x4x16xf32>
    %33 = vector.shape_cast %32 : vector<1x4x16xf32> to vector<4x16xf32>
    %c0_34 = arith.constant 0 : index
    %c199 = arith.constant 199 : index
    %34 = vector.load %arg6[%c0_34, %c199] : memref<4x326xf32, #tpu.memory_space<vmem>>, vector<4x16xf32>
    tpu.vector_store %arg6[%c0_34, %c199], %33 {strides = array<i32>} : memref<4x326xf32, #tpu.memory_space<vmem>>, vector<4x16xf32>,
    %c0_35 = arith.constant 0 : index
    %c0_36 = arith.constant 0 : index
    %c176 = arith.constant 176 : index
    %35 = vector.load %arg1[%c0_35, %c0_36, %c176] : memref<1x4x256xf32, #tpu.memory_space<vmem>>, vector<1x4x16xf32>
    %36 = vector.shape_cast %35 : vector<1x4x16xf32> to vector<4x16xf32>
    %c0_37 = arith.constant 0 : index
    %c217 = arith.constant 217 : index
    %37 = vector.load %arg6[%c0_37, %c217] : memref<4x326xf32, #tpu.memory_space<vmem>>, vector<4x16xf32>
    tpu.vector_store %arg6[%c0_37, %c217], %36 {strides = array<i32>} : memref<4x326xf32, #tpu.memory_space<vmem>>, vector<4x16xf32>,
    %c0_38 = arith.constant 0 : index
    %c0_39 = arith.constant 0 : index
    %c192 = arith.constant 192 : index
    %38 = vector.load %arg1[%c0_38, %c0_39, %c192] : memref<1x4x256xf32, #tpu.memory_space<vmem>>, vector<1x4x16xf32>
    %39 = vector.shape_cast %38 : vector<1x4x16xf32> to vector<4x16xf32>
    %c0_40 = arith.constant 0 : index
    %c235 = arith.constant 235 : index
    %40 = vector.load %arg6[%c0_40, %c235] : memref<4x326xf32, #tpu.memory_space<vmem>>, vector<4x16xf32>
    tpu.vector_store %arg6[%c0_40, %c235], %39 {strides = array<i32>} : memref<4x326xf32, #tpu.memory_space<vmem>>, vector<4x16xf32>,
    %c0_41 = arith.constant 0 : index
    %c0_42 = arith.constant 0 : index
    %c208 = arith.constant 208 : index
    %41 = vector.load %arg1[%c0_41, %c0_42, %c208] : memref<1x4x256xf32, #tpu.memory_space<vmem>>, vector<1x4x16xf32>
    %42 = vector.shape_cast %41 : vector<1x4x16xf32> to vector<4x16xf32>
    %c0_43 = arith.constant 0 : index
    %c253 = arith.constant 253 : index
    %43 = vector.load %arg6[%c0_43, %c253] : memref<4x326xf32, #tpu.memory_space<vmem>>, vector<4x16xf32>
    tpu.vector_store %arg6[%c0_43, %c253], %42 {strides = array<i32>} : memref<4x326xf32, #tpu.memory_space<vmem>>, vector<4x16xf32>,
    %c0_44 = arith.constant 0 : index
    %c0_45 = arith.constant 0 : index
    %c224 = arith.constant 224 : index
    %44 = vector.load %arg1[%c0_44, %c0_45, %c224] : memref<1x4x256xf32, #tpu.memory_space<vmem>>, vector<1x4x16xf32>
    %45 = vector.shape_cast %44 : vector<1x4x16xf32> to vector<4x16xf32>
    %c0_46 = arith.constant 0 : index
    %c271 = arith.constant 271 : index
    %46 = vector.load %arg6[%c0_46, %c271] : memref<4x326xf32, #tpu.memory_space<vmem>>, vector<4x16xf32>
    tpu.vector_store %arg6[%c0_46, %c271], %45 {strides = array<i32>} : memref<4x326xf32, #tpu.memory_space<vmem>>, vector<4x16xf32>,
    %c0_47 = arith.constant 0 : index
    %c0_48 = arith.constant 0 : index
    %c240 = arith.constant 240 : index
    %47 = vector.load %arg1[%c0_47, %c0_48, %c240] : memref<1x4x256xf32, #tpu.memory_space<vmem>>, vector<1x4x16xf32>
    %48 = vector.shape_cast %47 : vector<1x4x16xf32> to vector<4x16xf32>
    %c0_49 = arith.constant 0 : index
    %c289 = arith.constant 289 : index
    %49 = vector.load %arg6[%c0_49, %c289] : memref<4x326xf32, #tpu.memory_space<vmem>>, vector<4x16xf32>
    tpu.vector_store %arg6[%c0_49, %c289], %48 {strides = array<i32>} : memref<4x326xf32, #tpu.memory_space<vmem>>, vector<4x16xf32>,
    %cst_50 = arith.constant 0.000000e+00 : f32
    %50 = vector.broadcast %cst_50 : f32 to vector<8x288xf32>
    %c0_51 = arith.constant 0 : index
    %c0_52 = arith.constant 0 : index
    %51 = vector.load %arg6[%c0_51, %c0_52] : memref<4x326xf32, #tpu.memory_space<vmem>>, vector<4x288xf32>
    %c0_53 = arith.constant 0 : index
    %c0_54 = arith.constant 0 : index
    %c0_55 = arith.constant 0 : index
    %c0_56 = arith.constant 0 : index
    %52 = vector.load %arg2[%c0_53, %c0_54, %c0_55, %c0_56] : memref<3x3x8x4xf32, #tpu.memory_space<vmem>>, vector<1x1x8x4xf32>
    %53 = vector.shape_cast %52 : vector<1x1x8x4xf32> to vector<8x4xf32>
    %cst_57 = arith.constant dense<0.000000e+00> : vector<8x288xf32>
    %54 = tpu.matmul %53, %51, %cst_57 {dimension_numbers = #tpu.dot_dimension_numbers<[1], [0], [0], [1], [0, 0, 1, 1], [], []>} : vector<8x4xf32>, vector<4x288xf32>, vector<8x288xf32> -> vector<8x288xf32>
    %55 = arith.addf %50, %54 : vector<8x288xf32>
    %c0_58 = arith.constant 0 : index
    %c1 = arith.constant 1 : index
    %56 = vector.load %arg6[%c0_58, %c1] : memref<4x326xf32, #tpu.memory_space<vmem>>, vector<4x288xf32>
    %c0_59 = arith.constant 0 : index
    %c1_60 = arith.constant 1 : index
    %c0_61 = arith.constant 0 : index
    %c0_62 = arith.constant 0 : index
    %57 = vector.load %arg2[%c0_59, %c1_60, %c0_61, %c0_62] : memref<3x3x8x4xf32, #tpu.memory_space<vmem>>, vector<1x1x8x4xf32>
    %58 = vector.shape_cast %57 : vector<1x1x8x4xf32> to vector<8x4xf32>
    %cst_63 = arith.constant dense<0.000000e+00> : vector<8x288xf32>
    %59 = tpu.matmul %58, %56, %cst_63 {dimension_numbers = #tpu.dot_dimension_numbers<[1], [0], [0], [1], [0, 0, 1, 1], [], []>} : vector<8x4xf32>, vector<4x288xf32>, vector<8x288xf32> -> vector<8x288xf32>
    %60 = arith.addf %55, %59 : vector<8x288xf32>
    %c0_64 = arith.constant 0 : index
    %c2 = arith.constant 2 : index
    %61 = vector.load %arg6[%c0_64, %c2] : memref<4x326xf32, #tpu.memory_space<vmem>>, vector<4x288xf32>
    %c0_65 = arith.constant 0 : index
    %c2_66 = arith.constant 2 : index
    %c0_67 = arith.constant 0 : index
    %c0_68 = arith.constant 0 : index
    %62 = vector.load %arg2[%c0_65, %c2_66, %c0_67, %c0_68] : memref<3x3x8x4xf32, #tpu.memory_space<vmem>>, vector<1x1x8x4xf32>
    %63 = vector.shape_cast %62 : vector<1x1x8x4xf32> to vector<8x4xf32>
    %cst_69 = arith.constant dense<0.000000e+00> : vector<8x288xf32>
    %64 = tpu.matmul %63, %61, %cst_69 {dimension_numbers = #tpu.dot_dimension_numbers<[1], [0], [0], [1], [0, 0, 1, 1], [], []>} : vector<8x4xf32>, vector<4x288xf32>, vector<8x288xf32> -> vector<8x288xf32>
    %65 = arith.addf %60, %64 : vector<8x288xf32>
    %c0_70 = arith.constant 0 : index
    %c18 = arith.constant 18 : index
    %66 = vector.load %arg6[%c0_70, %c18] : memref<4x326xf32, #tpu.memory_space<vmem>>, vector<4x288xf32>
    %c1_71 = arith.constant 1 : index
    %c0_72 = arith.constant 0 : index
    %c0_73 = arith.constant 0 : index
    %c0_74 = arith.constant 0 : index
    %67 = vector.load %arg2[%c1_71, %c0_72, %c0_73, %c0_74] : memref<3x3x8x4xf32, #tpu.memory_space<vmem>>, vector<1x1x8x4xf32>
    %68 = vector.shape_cast %67 : vector<1x1x8x4xf32> to vector<8x4xf32>
    %cst_75 = arith.constant dense<0.000000e+00> : vector<8x288xf32>
    %69 = tpu.matmul %68, %66, %cst_75 {dimension_numbers = #tpu.dot_dimension_numbers<[1], [0], [0], [1], [0, 0, 1, 1], [], []>} : vector<8x4xf32>, vector<4x288xf32>, vector<8x288xf32> -> vector<8x288xf32>
    %70 = arith.addf %65, %69 : vector<8x288xf32>
    %c0_76 = arith.constant 0 : index
    %c19_77 = arith.constant 19 : index
    %71 = vector.load %arg6[%c0_76, %c19_77] : memref<4x326xf32, #tpu.memory_space<vmem>>, vector<4x288xf32>
    %c1_78 = arith.constant 1 : index
    %c1_79 = arith.constant 1 : index
    %c0_80 = arith.constant 0 : index
    %c0_81 = arith.constant 0 : index
    %72 = vector.load %arg2[%c1_78, %c1_79, %c0_80, %c0_81] : memref<3x3x8x4xf32, #tpu.memory_space<vmem>>, vector<1x1x8x4xf32>
    %73 = vector.shape_cast %72 : vector<1x1x8x4xf32> to vector<8x4xf32>
    %cst_82 = arith.constant dense<0.000000e+00> : vector<8x288xf32>
    %74 = tpu.matmul %73, %71, %cst_82 {dimension_numbers = #tpu.dot_dimension_numbers<[1], [0], [0], [1], [0, 0, 1, 1], [], []>} : vector<8x4xf32>, vector<4x288xf32>, vector<8x288xf32> -> vector<8x288xf32>
    %75 = arith.addf %70, %74 : vector<8x288xf32>
    %c0_83 = arith.constant 0 : index
    %c20 = arith.constant 20 : index
    %76 = vector.load %arg6[%c0_83, %c20] : memref<4x326xf32, #tpu.memory_space<vmem>>, vector<4x288xf32>
    %c1_84 = arith.constant 1 : index
    %c2_85 = arith.constant 2 : index
    %c0_86 = arith.constant 0 : index
    %c0_87 = arith.constant 0 : index
    %77 = vector.load %arg2[%c1_84, %c2_85, %c0_86, %c0_87] : memref<3x3x8x4xf32, #tpu.memory_space<vmem>>, vector<1x1x8x4xf32>
    %78 = vector.shape_cast %77 : vector<1x1x8x4xf32> to vector<8x4xf32>
    %cst_88 = arith.constant dense<0.000000e+00> : vector<8x288xf32>
    %79 = tpu.matmul %78, %76, %cst_88 {dimension_numbers = #tpu.dot_dimension_numbers<[1], [0], [0], [1], [0, 0, 1, 1], [], []>} : vector<8x4xf32>, vector<4x288xf32>, vector<8x288xf32> -> vector<8x288xf32>
    %80 = arith.addf %75, %79 : vector<8x288xf32>
    %c0_89 = arith.constant 0 : index
    %c36 = arith.constant 36 : index
    %81 = vector.load %arg6[%c0_89, %c36] : memref<4x326xf32, #tpu.memory_space<vmem>>, vector<4x288xf32>
    %c2_90 = arith.constant 2 : index
    %c0_91 = arith.constant 0 : index
    %c0_92 = arith.constant 0 : index
    %c0_93 = arith.constant 0 : index
    %82 = vector.load %arg2[%c2_90, %c0_91, %c0_92, %c0_93] : memref<3x3x8x4xf32, #tpu.memory_space<vmem>>, vector<1x1x8x4xf32>
    %83 = vector.shape_cast %82 : vector<1x1x8x4xf32> to vector<8x4xf32>
    %cst_94 = arith.constant dense<0.000000e+00> : vector<8x288xf32>
    %84 = tpu.matmul %83, %81, %cst_94 {dimension_numbers = #tpu.dot_dimension_numbers<[1], [0], [0], [1], [0, 0, 1, 1], [], []>} : vector<8x4xf32>, vector<4x288xf32>, vector<8x288xf32> -> vector<8x288xf32>
    %85 = arith.addf %80, %84 : vector<8x288xf32>
    %c0_95 = arith.constant 0 : index
    %c37_96 = arith.constant 37 : index
    %86 = vector.load %arg6[%c0_95, %c37_96] : memref<4x326xf32, #tpu.memory_space<vmem>>, vector<4x288xf32>
    %c2_97 = arith.constant 2 : index
    %c1_98 = arith.constant 1 : index
    %c0_99 = arith.constant 0 : index
    %c0_100 = arith.constant 0 : index
    %87 = vector.load %arg2[%c2_97, %c1_98, %c0_99, %c0_100] : memref<3x3x8x4xf32, #tpu.memory_space<vmem>>, vector<1x1x8x4xf32>
    %88 = vector.shape_cast %87 : vector<1x1x8x4xf32> to vector<8x4xf32>
    %cst_101 = arith.constant dense<0.000000e+00> : vector<8x288xf32>
    %89 = tpu.matmul %88, %86, %cst_101 {dimension_numbers = #tpu.dot_dimension_numbers<[1], [0], [0], [1], [0, 0, 1, 1], [], []>} : vector<8x4xf32>, vector<4x288xf32>, vector<8x288xf32> -> vector<8x288xf32>
    %90 = arith.addf %85, %89 : vector<8x288xf32>
    %c0_102 = arith.constant 0 : index
    %c38 = arith.constant 38 : index
    %91 = vector.load %arg6[%c0_102, %c38] : memref<4x326xf32, #tpu.memory_space<vmem>>, vector<4x288xf32>
    %c2_103 = arith.constant 2 : index
    %c2_104 = arith.constant 2 : index
    %c0_105 = arith.constant 0 : index
    %c0_106 = arith.constant 0 : index
    %92 = vector.load %arg2[%c2_103, %c2_104, %c0_105, %c0_106] : memref<3x3x8x4xf32, #tpu.memory_space<vmem>>, vector<1x1x8x4xf32>
    %93 = vector.shape_cast %92 : vector<1x1x8x4xf32> to vector<8x4xf32>
    %cst_107 = arith.constant dense<0.000000e+00> : vector<8x288xf32>
    %94 = tpu.matmul %93, %91, %cst_107 {dimension_numbers = #tpu.dot_dimension_numbers<[1], [0], [0], [1], [0, 0, 1, 1], [], []>} : vector<8x4xf32>, vector<4x288xf32>, vector<8x288xf32> -> vector<8x288xf32>
    %95 = arith.addf %90, %94 : vector<8x288xf32>
    %c0_108 = arith.constant 0 : index
    %c0_109 = arith.constant 0 : index
    %96 = vector.load %arg3[%c0_108, %c0_109] : memref<8x1xf32, #tpu.memory_space<vmem>>, vector<8x1xf32>
    %97 = vector.broadcast %96 : vector<8x1xf32> to vector<8x288xf32>
    %98 = arith.mulf %95, %97 : vector<8x288xf32>
    %c0_110 = arith.constant 0 : index
    %c0_111 = arith.constant 0 : index
    %99 = vector.load %arg4[%c0_110, %c0_111] : memref<8x1xf32, #tpu.memory_space<vmem>>, vector<8x1xf32>
    %100 = vector.broadcast %99 : vector<8x1xf32> to vector<8x288xf32>
    %101 = arith.addf %98, %100 : vector<8x288xf32>
    %cst_112 = arith.constant 0.000000e+00 : f32
    %102 = vector.broadcast %cst_112 : f32 to vector<8x288xf32>
    %103 = arith.maximumf %101, %102 : vector<8x288xf32>
    %104 = math.absf %101 : vector<8x288xf32>
    %cst_113 = arith.constant 0.000000e+00 : f32
    %105 = vector.broadcast %cst_113 : f32 to vector<8x288xf32>
    %106 = arith.subf %105, %104 : vector<8x288xf32>
    %107 = math.exp %106 : vector<8x288xf32>
    %cst_114 = arith.constant 1.000000e+00 : f32
    %108 = vector.broadcast %cst_114 : f32 to vector<8x288xf32>
    %109 = arith.addf %108, %107 : vector<8x288xf32>
    %110 = math.log %109 : vector<8x288xf32>
    %111 = arith.addf %103, %110 : vector<8x288xf32>
    %112 = math.tanh %111 : vector<8x288xf32>
    %113 = arith.mulf %101, %112 : vector<8x288xf32>
    %114 = vector.shape_cast %113 : vector<8x288xf32> to vector<1x8x288xf32>
    %c0_115 = arith.constant 0 : index
    %c0_116 = arith.constant 0 : index
    %c0_117 = arith.constant 0 : index
    %115 = vector.load %arg5[%c0_115, %c0_116, %c0_117] : memref<1x8x288xf32, #tpu.memory_space<vmem>>, vector<1x8x288xf32>
    tpu.vector_store %arg5[%c0_115, %c0_116, %c0_117], %114 {strides = array<i32>} : memref<1x8x288xf32, #tpu.memory_space<vmem>>, vector<1x8x288xf32>,
    return
  }
  func.func @transform_0(%arg0: i32) -> (i32, i32, i32) {
    %c0_i32 = arith.constant 0 : i32
    %c0_i32_0 = arith.constant 0 : i32
    %c0_i32_1 = arith.constant 0 : i32
    return %arg0, %c0_i32, %c0_i32_0 : i32, i32, i32
  }
  func.func @transform_1(%arg0: i32) -> (i32, i32, i32, i32) {
    %c0_i32 = arith.constant 0 : i32
    %c0_i32_0 = arith.constant 0 : i32
    %c0_i32_1 = arith.constant 0 : i32
    %c0_i32_2 = arith.constant 0 : i32
    %c0_i32_3 = arith.constant 0 : i32
    return %c0_i32, %c0_i32_0, %c0_i32_1, %c0_i32_2 : i32, i32, i32, i32
  }
  func.func @transform_2(%arg0: i32) -> (i32, i32) {
    %c0_i32 = arith.constant 0 : i32
    %c0_i32_0 = arith.constant 0 : i32
    %c0_i32_1 = arith.constant 0 : i32
    return %c0_i32, %c0_i32_0 : i32, i32
  }
  func.func @transform_3(%arg0: i32) -> (i32, i32) {
    %c0_i32 = arith.constant 0 : i32
    %c0_i32_0 = arith.constant 0 : i32
    %c0_i32_1 = arith.constant 0 : i32
    return %c0_i32, %c0_i32_0 : i32, i32
  }
  func.func @transform_4(%arg0: i32) -> (i32, i32, i32) {
    %c0_i32 = arith.constant 0 : i32
    %c0_i32_0 = arith.constant 0 : i32
    %c0_i32_1 = arith.constant 0 : i32
    return %arg0, %c0_i32, %c0_i32_0 : i32, i32, i32
  }
}

</mosaic_0001>

<bundles_post_ra>
// kernel: base_conv_forward.1
= control target key start
LH: loop header
LB: loop body
LE: loop exit
PB: predicated region body
PF: predicated region fallthrough
CT: control target
= control target key end

     0   :  { %s2179_s15 = smov 0   ;;  %s2370_s0 = inlined_call_operand.vmem [shape: f32[2,4,256], index: 0, kind: input, shape index: {}]   ;;  %s2371_s1 = inlined_call_operand.vmem [shape: f32[3,3,8,4], index: 1, kind: input, shape index: {}]   ;;  %s2372_s2 = inlined_call_operand.vmem [shape: f32[8,1], index: 2, kind: input, shape index: {}]   ;;  %s2373_s3 = inlined_call_operand.vmem [shape: f32[8,1], index: 3, kind: input, shape index: {}]   ;;  %s2374_s4 = inlined_call_operand.vmem [shape: f32[2,8,288], index: 4, kind: output, shape index: {}]  }
   0x1 LB: > { %s1935_s16 = sadd.s32 4294967295, %s2125_s15   ;;  %p1939_p0 = scmp.ge.s32.totalorder %s2125_s15, 1  ;;  %s2125_s15 = sphi %s2179_s15, %s14_s15  }
   0x2   : > { %p162_p1 = scmp.lt.s32.totalorder %s2125_s15, 3 }
   0x4   : > { %p163_p2 = pnand %p1939_p0, %p162_p1 }
   0x5   : > { %p188_p3 = scmp.lt.s32.totalorder (!%p163_p2), %s1935_s16, 1  ;;  %s2128_s21 = smov (!%p163_p2), 23  }
   0x6   : > { %166 = sbr.rel (%p163_p2) target bundleno = 585 (0x249), region = 36  ;;  %s2129_s22 = smov (!%p163_p2), 19  }
   0x7   : > { %s2130_s23 = smov (!%p163_p2), 25   ;;  %s2131_s24 = smov (!%p163_p2), 21  }
   0x8   : > { %s2132_s25 = smov (!%p163_p2), 27   ;;  %s2133_s26 = smov (!%p163_p2), 31  }
   0x9   : > { %s2134_s27 = smov (!%p163_p2), 33   ;;  %s2135_s28 = smov (!%p163_p2), 29  }
   0xa   : > { %s2136_s29 = smov (!%p163_p2), 37   ;;  %s2137_s30 = smov (!%p163_p2), 35  }
   0xb   : > { %v2127_v0 = vmov 0.0   ;;  %s2376_s16 = smov (!%p188_p3, %s1935_s16), 1  ;;  %vm199_vm0 = vcmask 568320   ;;  %s2138_s5 = smov 45   ;;  %vm206_vm1 = vcmask 281752   ;;  %vm213_vm2 = vcmask 429352  }
   0xc   : > { %198 = vst [vmem:[#allocation2] sm:$0xff] %v2127_v0  ;;  %2017 = vmatprep.subr.mxu1 %v2127_v0  ;;  %415 = vmatprep.mubr.f32.mxu0 %v2127_v0  ;;  %s1998_s17 = sshll.u32 %s2376_s16, 3  ;;  %200 = vst.msk [vmem:[#allocation2 + $0x8] sm:$0xf] %vm199_vm0, %v2127_v0  ;;  %s2139_s6 = smov 39   ;;  %vm220_vm3 = vcmask 576952  }
   0xd   : > { %s2196_s20 = scalar_lea.vmem %s2370_s0, %s1998_s17  ;;  %s2140_s7 = smov 41   ;;  %vm227_vm4 = vcmask 724552   ;;  %vm234_vm5 = vcmask 872152   ;;  %vm251_vm6 = vcmask 1044472   ;;  %vm252_vm7 = vcmask 121860   ;;  %v1825_v48 = vld [vmem:[%s2372_s2] sm:$0xff] }
   0xe   : > { %v215_v1 = vld [vmem:[%s2196_s20] sm:$0xf]  ;;  %v269_v9 = vld [vmem:[%s2196_s20 + $0x4] sm:$0xf]  ;;  %s2141_s8 = smov 43   ;;  %s2142_s9 = smov 47   ;;  %vm253_vm10 = vmor %vm252_vm7, %vm251_vm6 }
   0xf   : > { %v201_v2 = vld [vmem:[%s2196_s20] sm:$0xf]  ;;  %217 = vrot.lane.b32.xlu1 %v215_v1, %s2128_s21  ;;  %v262_v10 = vld [vmem:[%s2196_s20 + $0x4] sm:$0xf]  ;;  %s2143_s10 = smov 49   ;;  %vm248_vm8 = vcmask 252928  }
  0x10   : > { %203 = vrot.lane.b32.xlu0 %v201_v2, %s2129_s22  ;;  %v222_v3 = vld [vmem:[%s2196_s20] sm:$0xf]  ;;  %v297_v11 = vld [vmem:[%s2196_s20 + $0x4] sm:$0xf]  ;;  %vm241_vm9 = vcmask 1019752   ;;  %vm260_vm11 = vcmask 265352  }
  0x11   : > { %v208_v4 = vld [vmem:[%s2196_s20] sm:$0xf]  ;;  %v276_v12 = vld [vmem:[%s2196_s20 + $0x4] sm:$0xf]  ;;  %vm267_vm12 = vcmask 412952   ;;  %vm274_vm13 = vcmask 560552  }
  0x12   : > { %v229_v5 = vld [vmem:[%s2196_s20] sm:$0xf]  ;;  %v283_v13 = vld [vmem:[%s2196_s20 + $0x4] sm:$0xf]  ;;  %vm281_vm14 = vcmask 708152   ;;  %vm305_vm15 = vcmask 1044456  }
  0x13   : > { %224 = vrot.lane.b32.xlu1 %v222_v3, %s2130_s23  ;;  %v243_v6 = vld [vmem:[%s2196_s20] sm:$0xf]  ;;  %v290_v14 = vld [vmem:[%s2196_s20 + $0x4] sm:$0xf]  ;;  %vm306_vm0 = vcmask 105476   ;;  %vm321_vm6 = vcmask 396552  }
  0x14   : > { %210 = vrot.lane.b32.xlu0 %v208_v4, %s2131_s24  ;;  %v255_v7 = vld [vmem:[%s2196_s20] sm:$0xf]  ;;  %v309_v15 = vld [vmem:[%s2196_s20 + $0x4] sm:$0xf]  ;;  %vm2144_vm7 = vmmov 0   ;;  %s2145_s11 = smov 126  }
  0x15   : > { %v236_v8 = vld [vmem:[%s2196_s20] sm:$0xf]  ;;  %v316_v16 = vld [vmem:[%s2196_s20 + $0x4] sm:$0xf]  ;;  %2019 = vmatprep.mubr.msk.f32.mxu1 %vm2144_vm7, %v2127_v0  ;;  %s2146_s12 = smov 127   ;;  %s2147_s13 = smov 109  }
  0x16   : > { %s2148_s14 = smov 110   ;;  %s2149_s17 = smov 108   ;;  %v2152_v46 = vmov 0   ;;  %v1834_v49 = vld [vmem:[%s2373_s3] sm:$0xff]  ;;  %v1943_v54 = vld [vmem:[%s2371_s1 + $0x8] sm:$0xff]  ;;  %v1954_v1 = vld [vmem:[%s2371_s1 + $0x10] sm:$0xff] }
  0x17   : > { %231 = vrot.lane.b32.xlu1 %v229_v5, %s2132_s25  ;;  %s2150_s18 = smov 92   ;;  %s2151_s19 = smov 91   ;;  %2098 = vset.pattern.permute.xlu0 %v2152_v46  ;;  %v325_v57 = vld [vmem:[%s2371_s1] sm:$0xff] }
  0x18   : > { %245 = vrot.lane.b32.xlu0 %v243_v6, %s2133_s26  ;;  %2099 = vset.pattern.permute.xlu1 %v2152_v46  ;;  %s2153_s20 = smov 90   ;;  %v1960_v6 = vld [vmem:[%s2371_s1 + $0x18] sm:$0xff] }
  0x1b   : > { %257 = vrot.lane.b32.xlu1 %v255_v7, %s2134_s27 }
  0x1c   : > { %238 = vrot.lane.b32.xlu0 %v236_v8, %s2135_s28 }
  0x1f   : > { %271 = vrot.lane.b32.xlu1 %v269_v9, %s2136_s29 }
  0x20   : > { %264 = vrot.lane.b32.xlu0 %v262_v10, %s2137_s30 }
  0x23   : > { %299 = vrot.lane.b32.xlu1 %v297_v11, %s2138_s5  ;;  %v1966_v11 = vld [vmem:[%s2371_s1 + $0x20] sm:$0xff] }
  0x24   : > { %278 = vrot.lane.b32.xlu0 %v276_v12, %s2139_s6 }
  0x27   : > { %292 = vrot.lane.b32.xlu1 %v290_v14, %s2141_s8 }
  0x28   : > { %285 = vrot.lane.b32.xlu0 %v283_v13, %s2140_s7 }
  0x2b   : > { %318 = vrot.lane.b32.xlu1 %v316_v16, %s2143_s10  ;;  %v1972_v16 = vld [vmem:[%s2371_s1 + $0x28] sm:$0xff] }
  0x2c   : > { %311 = vrot.lane.b32.xlu0 %v309_v15, %s2142_s9 }
  0x81   : > { %v218_v17 = vpop.permute.xlu1 %217 }
  0x82   : > { %v204_v18 = vpop.permute.xlu0 %203 }
  0x83   : > { %207 = vst.msk [vmem:[#allocation2] sm:$0xf] %vm206_vm1, %v204_v18  ;;  %vm288_vm1 = vcmask 855752  }
  0x85   : > { %v225_v19 = vpop.permute.xlu1 %224 }
  0x86   : > { %v211_v20 = vpop.permute.xlu0 %210 }
  0x87   : > { %214 = vst.msk [vmem:[#allocation2] sm:$0xf] %vm213_vm2, %v211_v20  ;;  %vm302_vm2 = vcmask 367616  }
  0x88   : > { %221 = vst.msk [vmem:[#allocation2] sm:$0xf] %vm220_vm3, %v218_v17  ;;  %vm295_vm3 = vcmask 1003352  }
  0x89   : > { %228 = vst.msk [vmem:[#allocation2] sm:$0xf] %vm227_vm4, %v225_v19  ;;  %v232_v21 = vpop.permute.xlu1 %231  ;;  %vm307_vm4 = vmor %vm306_vm0, %vm305_vm15  ;;  %vm1331_vm15 = vcmask 752640   ;;  %vm1500_vm0 = vcmask 744448  }
  0x8a   : > { %v246_v22 = vpop.permute.xlu0 %245  ;;  %235 = vst.msk [vmem:[#allocation2] sm:$0xf] %vm234_vm5, %v232_v21  ;;  %vm314_vm5 = vcmask 248952   ;;  %v1978_v21 = vld [vmem:[%s2371_s1 + $0x30] sm:$0xff] }
  0x8b   : > { %v247_v23 = vrot.slane %v246_v22, 4 }
  0x8d   : > { %v258_v24 = vpop.permute.xlu1 %257  ;;  %v249_v26 = vsel %vm248_vm8, %v247_v23, %v246_v22  ;;  %vm344_vm8 = vcmask 1043456  }
  0x8e   : > { %v239_v25 = vpop.permute.xlu0 %238 }
  0x8f   : > { %242 = vst.msk [vmem:[#allocation2] sm:$0xf] %vm241_vm9, %v239_v25  ;;  %vm340_vm9 = vcmask 31744  }
  0x90   : > { %254 = vst.msk [vmem:[#allocation2] sm:$0xff] %vm253_vm10, %v249_v26  ;;  %vm337_vm10 = vcmask 1039360   ;;  %v1984_v26 = vld [vmem:[%s2371_s1 + $0x38] sm:$0xff] }
  0x91   : > { %261 = vst.msk [vmem:[#allocation2 + $0x4] sm:$0xf] %vm260_vm11, %v258_v24  ;;  %v272_v27 = vpop.permute.xlu1 %271  ;;  %vm655_vm11 = vcmask 1031168  }
  0x92   : > { %v265_v28 = vpop.permute.xlu0 %264 }
  0x93   : > { %268 = vst.msk [vmem:[#allocation2 + $0x4] sm:$0xf] %vm267_vm12, %v265_v28  ;;  %vm824_vm12 = vcmask 900096  }
  0x94   : > { %275 = vst.msk [vmem:[#allocation2 + $0x4] sm:$0xf] %vm274_vm13, %v272_v27  ;;  %vm993_vm13 = vcmask 891904  }
  0x95   : > { %v300_v29 = vpop.permute.xlu1 %299 }
  0x96   : > { %v279_v30 = vpop.permute.xlu0 %278  ;;  %v301_v31 = vrot.slane %v300_v29, 4 }
  0x97   : > { %282 = vst.msk [vmem:[#allocation2 + $0x4] sm:$0xf] %vm281_vm14, %v279_v30  ;;  %vm1162_vm14 = vcmask 883712  }
  0x98   : > { %v303_v34 = vsel %vm302_vm2, %v301_v31, %v300_v29  ;;  %v1990_v31 = vld [vmem:[%s2371_s1 + $0x40] sm:$0xff]  ;;  %vm1878_vm2 = vcmask 261120  }
  0x99   : > { %v293_v33 = vpop.permute.xlu1 %292 }
  0x9a   : > { %v286_v32 = vpop.permute.xlu0 %285 }
  0x9b   : > { %289 = vst.msk [vmem:[#allocation2 + $0x4] sm:$0xf] %vm288_vm1, %v286_v32  ;;  %vm1669_vm1 = vcmask 736256  }
  0x9c   : > { %296 = vst.msk [vmem:[#allocation2 + $0x4] sm:$0xf] %vm295_vm3, %v293_v33 }
  0x9d   : > { %308 = vst.msk [vmem:[#allocation2 + $0x4] sm:$0xff] %vm307_vm4, %v303_v34  ;;  %v319_v36 = vpop.permute.xlu1 %318 }
  0x9e   : > { %v312_v35 = vpop.permute.xlu0 %311 }
  0x9f   : > { %315 = vst.msk [vmem:[#allocation2 + $0x8] sm:$0xf] %vm314_vm5, %v312_v35 }
  0xa0   : > { %322 = vst.msk [vmem:[#allocation2 + $0x8] sm:$0xf] %vm321_vm6, %v319_v36 }
  0xa4   : > { %v2217_v37 = vld [vmem:[#allocation2] sm:$0xff] }
  0xa5   : > { %649 = vrot.lane.b32.xlu1 %v2217_v37, %s2145_s11  ;;  %331 = vrot.lane.b32.xlu0 %v2217_v37, %s2146_s12  ;;  %v2226_v39 = vcombine.high %v2217_v37, %v2217_v37 }
  0xa7   : > { %v324_v38 = vld [vmem:[#allocation2 + $0x8] sm:$0xf] }
  0xa8   : > { %v643_v40 = vld [vmem:[#allocation2 + $0x8] sm:$0xf] }
  0xa9   : > { %987 = vrot.lane.b32.xlu1 %v2217_v37, %s2147_s13  ;;  %818 = vrot.lane.b32.xlu0 %v2217_v37, %s2148_s14  ;;  %v812_v41 = vld [vmem:[#allocation2 + $0x8] sm:$0xf] }
  0xaa   : > { %v981_v42 = vld [vmem:[#allocation2 + $0x8] sm:$0xf] }
  0xab   : > { %v1150_v43 = vld [vmem:[#allocation2 + $0x8] sm:$0xf] }
  0xac   : > { %v1319_v44 = vld [vmem:[#allocation2 + $0x8] sm:$0xf] }
  0xad   : > { %1156 = vrot.lane.b32.xlu0 %v2217_v37, %s2149_s17  ;;  %335 = vrot.lane.b32.xlu1 %v324_v38, %s2146_s12  ;;  %v1488_v45 = vld [vmem:[#allocation2 + $0x8] sm:$0xf] }
  0xae   : > { %v1657_v47 = vld [vmem:[#allocation2 + $0x8] sm:$0xf] }
  0xb1   : > { %333 = vrot.lane.b32.xlu0 %v2226_v39, %s2146_s12  ;;  %1325 = vrot.lane.b32.xlu1 %v2217_v37, %s2150_s18 }
  0xb5   : > { %1494 = vrot.lane.b32.xlu0 %v2217_v37, %s2151_s19  ;;  %651 = vrot.lane.b32.xlu1 %v2226_v39, %s2145_s11 }
  0xb9   : > { %653 = vrot.lane.b32.xlu0 %v643_v40, %s2145_s11  ;;  %822 = vrot.lane.b32.xlu1 %v812_v41, %s2148_s14 }
  0xbd   : > { %820 = vrot.lane.b32.xlu0 %v2226_v39, %s2148_s14  ;;  %989 = vrot.lane.b32.xlu1 %v2226_v39, %s2147_s13 }
  0xc1   : > { %991 = vrot.lane.b32.xlu0 %v981_v42, %s2147_s13  ;;  %1160 = vrot.lane.b32.xlu1 %v1150_v43, %s2149_s17 }
  0xc5   : > { %1158 = vrot.lane.b32.xlu0 %v2226_v39, %s2149_s17  ;;  %1327 = vrot.lane.b32.xlu1 %v2226_v39, %s2150_s18 }
  0xc9   : > { %1329 = vrot.lane.b32.xlu0 %v1319_v44, %s2150_s18  ;;  %1498 = vrot.lane.b32.xlu1 %v1488_v45, %s2151_s19 }
  0xcd   : > { %1496 = vrot.lane.b32.xlu0 %v2226_v39, %s2151_s19  ;;  %1665 = vrot.lane.b32.xlu1 %v2226_v39, %s2153_s20  ;;  %s2062_s19 = smul.u32 24, %s2376_s16 }
  0xcf   : > { %s197_s22 = scalar_lea.vmem %s2374_s4, %s2062_s19 }
  0xd1   : > { %1667 = vrot.lane.b32.xlu0 %v1657_v47, %s2153_s20  ;;  %1663 = vrot.lane.b32.xlu1 %v2217_v37, %s2153_s20 }
  0xd5   : > { %1828 = vperm.xlu0 %2098, %v1825_v48   ;;  %1837 = vperm.xlu1 %2099, %v1834_v49  }
 0x117   : > { %v650_v50 = vpop.permute.xlu1 %649  ;;  %v332_v51 = vpop.permute.xlu0 %331 }
 0x11b   : > { %v2245_v52 = vpop.permute.xlu1 %987  ;;  %v819_v53 = vpop.permute.xlu0 %818 }
 0x11f   : > { %v336_v55 = vpop.permute.xlu1 %335  ;;  %v2250_v56 = vpop.permute.xlu0 %1156 }
 0x120   : > { %2018 = vmatpush3.msk.msra.mxu1 %vm344_vm8, %v336_v55 }
 0x121   : > { %2022 = vmatprep.subr.mxu1 %v2127_v0  ;;  %2020 = vmatmul.mubr.msk.f32.vlgmr.msra.gmra.mxu1 %vm340_vm9, %v1943_v54 }
 0x122   : > { %2023 = vmatpush3.msk.msra.mxu1 %vm344_vm8, %v324_v38  ;;  %2024 = vmatprep.mubr.msk.f32.mxu1 %vm2144_vm7, %v2127_v0 }
 0x123   : > { %v2261_v58 = vpop.permute.xlu1 %1325  ;;  %v334_v59 = vpop.permute.xlu0 %333  ;;  %2027 = vmatprep.subr.mxu1 %v2127_v0 }
 0x124   : > { %v339_v60 = vsel %vm337_vm10, %v334_v59, %v336_v55  ;;  %v338_v61 = vsel %vm337_vm10, %v332_v51, %v334_v59 }
 0x125   : > { %1944 = vmatprep.subr.msk.mxu0 %vm344_vm8, %v339_v60  ;;  %2025 = vmatmul.mubr.msk.f32.vlgmr.msra.gmra.mxu1 %vm340_vm9, %v325_v57 }
 0x126   : > { %1945 = vmatpush1.msk.msra.mxu0 %vm344_vm8, %v338_v61  ;;  %2029 = vmatprep.mubr.msk.f32.mxu1 %vm2144_vm7, %v2127_v0 }
 0x127   : > { %v652_v62 = vpop.permute.xlu1 %651  ;;  %1946 = vmatmul.mubr.msk.f32.vlgmr.msra.gmra.mxu0 %vm340_vm9, %v1943_v54  ;;  %1949 = vmatprep.subr.msk.mxu0 %vm344_vm8, %v2226_v39  ;;  %v2272_v63 = vpop.permute.xlu0 %1494 }
 0x128   : > { %1950 = vmatpush1.msk.msra.mxu0 %vm344_vm8, %v2217_v37  ;;  %565 = vmatprep.mubr.f32.mxu0 %v2127_v0  ;;  %v656_v5 = vsel %vm655_vm11, %v650_v50, %v652_v62 }
 0x12b   : > { %v823_v2 = vpop.permute.xlu1 %822  ;;  %1951 = vmatmul.mubr.msk.f32.vlgmr.msra.gmra.mxu0 %vm340_vm9, %v325_v57  ;;  %v654_v3 = vpop.permute.xlu0 %653 }
 0x12c   : > { %v657_v4 = vsel %vm655_vm11, %v652_v62, %v654_v3  ;;  %2028 = vmatpush3.msk.msra.mxu1 %vm344_vm8, %v654_v3  ;;  %731 = vmatprep.mubr.f32.mxu0 %v2127_v0 }
 0x12d   : > { %1955 = vmatprep.subr.msk.mxu0 %vm344_vm8, %v657_v4  ;;  %2030 = vmatmul.mubr.msk.f32.vlgmr.msra.gmra.mxu1 %vm340_vm9, %v1954_v1 }
 0x12e   : > { %2032 = vmatprep.subr.mxu1 %v2127_v0  ;;  %1956 = vmatpush1.msk.msra.mxu0 %vm344_vm8, %v656_v5 }
 0x12f   : > { %2033 = vmatpush3.msk.msra.mxu1 %vm344_vm8, %v823_v2  ;;  %v990_v7 = vpop.permute.xlu1 %989  ;;  %1957 = vmatmul.mubr.msk.f32.vlgmr.msra.gmra.mxu0 %vm340_vm9, %v1954_v1  ;;  %v821_v8 = vpop.permute.xlu0 %820 }
 0x130   : > { %v825_v9 = vsel %vm824_vm12, %v819_v53, %v821_v8  ;;  %v826_v10 = vsel %vm824_vm12, %v821_v8, %v823_v2  ;;  %2034 = vmatprep.mubr.msk.f32.mxu1 %vm2144_vm7, %v2127_v0  ;;  %900 = vmatprep.mubr.f32.mxu0 %v2127_v0  ;;  %v994_v15 = vsel %vm993_vm13, %v2245_v52, %v990_v7 }
 0x131   : > { %1961 = vmatprep.subr.msk.mxu0 %vm344_vm8, %v826_v10  ;;  %2035 = vmatmul.mubr.msk.f32.vlgmr.msra.gmra.mxu1 %vm340_vm9, %v1960_v6 }
 0x132   : > { %1962 = vmatpush1.msk.msra.mxu0 %vm344_vm8, %v825_v9  ;;  %2037 = vmatprep.subr.mxu1 %v2127_v0 }
 0x133   : > { %v1161_v12 = vpop.permute.xlu1 %1160  ;;  %1963 = vmatmul.mubr.msk.f32.vlgmr.msra.gmra.mxu0 %vm340_vm9, %v1960_v6  ;;  %v992_v13 = vpop.permute.xlu0 %991  ;;  %2039 = vmatprep.mubr.msk.f32.mxu1 %vm2144_vm7, %v2127_v0 }
 0x134   : > { %v995_v14 = vsel %vm993_vm13, %v990_v7, %v992_v13  ;;  %2038 = vmatpush3.msk.msra.mxu1 %vm344_vm8, %v992_v13  ;;  %1069 = vmatprep.mubr.f32.mxu0 %v2127_v0 }
 0x135   : > { %1967 = vmatprep.subr.msk.mxu0 %vm344_vm8, %v995_v14  ;;  %2040 = vmatmul.mubr.msk.f32.vlgmr.msra.gmra.mxu1 %vm340_vm9, %v1966_v11 }
 0x136   : > { %2042 = vmatprep.subr.mxu1 %v2127_v0  ;;  %1968 = vmatpush1.msk.msra.mxu0 %vm344_vm8, %v994_v15 }
 0x137   : > { %2043 = vmatpush3.msk.msra.mxu1 %vm344_vm8, %v1161_v12  ;;  %v1328_v17 = vpop.permute.xlu1 %1327  ;;  %1969 = vmatmul.mubr.msk.f32.vlgmr.msra.gmra.mxu0 %vm340_vm9, %v1966_v11  ;;  %v1159_v18 = vpop.permute.xlu0 %1158 }
 0x138   : > { %v1163_v19 = vsel %vm1162_vm14, %v2250_v56, %v1159_v18  ;;  %v1164_v20 = vsel %vm1162_vm14, %v1159_v18, %v1161_v12  ;;  %2044 = vmatprep.mubr.msk.f32.mxu1 %vm2144_vm7, %v2127_v0  ;;  %1238 = vmatprep.mubr.f32.mxu0 %v2127_v0  ;;  %v1332_v25 = vsel %vm1331_vm15, %v2261_v58, %v1328_v17 }
 0x139   : > { %1973 = vmatprep.subr.msk.mxu0 %vm344_vm8, %v1164_v20  ;;  %2045 = vmatmul.mubr.msk.f32.vlgmr.msra.gmra.mxu1 %vm340_vm9, %v1972_v16 }
 0x13a   : > { %1974 = vmatpush1.msk.msra.mxu0 %vm344_vm8, %v1163_v19  ;;  %2047 = vmatprep.subr.mxu1 %v2127_v0 }
 0x13b   : > { %v1499_v22 = vpop.permute.xlu1 %1498  ;;  %1975 = vmatmul.mubr.msk.f32.vlgmr.msra.gmra.mxu0 %vm340_vm9, %v1972_v16  ;;  %v1330_v23 = vpop.permute.xlu0 %1329  ;;  %2049 = vmatprep.mubr.msk.f32.mxu1 %vm2144_vm7, %v2127_v0 }
 0x13c   : > { %v1333_v24 = vsel %vm1331_vm15, %v1328_v17, %v1330_v23  ;;  %2048 = vmatpush3.msk.msra.mxu1 %vm344_vm8, %v1330_v23  ;;  %1407 = vmatprep.mubr.f32.mxu0 %v2127_v0 }
 0x13d   : > { %1979 = vmatprep.subr.msk.mxu0 %vm344_vm8, %v1333_v24  ;;  %2050 = vmatmul.mubr.msk.f32.vlgmr.msra.gmra.mxu1 %vm340_vm9, %v1978_v21 }
 0x13e   : > { %2052 = vmatprep.subr.mxu1 %v2127_v0  ;;  %1980 = vmatpush1.msk.msra.mxu0 %vm344_vm8, %v1332_v25 }
 0x13f   : > { %2053 = vmatpush3.msk.msra.mxu1 %vm344_vm8, %v1499_v22  ;;  %v1666_v27 = vpop.permute.xlu1 %1665  ;;  %1981 = vmatmul.mubr.msk.f32.vlgmr.msra.gmra.mxu0 %vm340_vm9, %v1978_v21  ;;  %v1497_v28 = vpop.permute.xlu0 %1496 }
 0x140   : > { %v1501_v29 = vsel %vm1500_vm0, %v2272_v63, %v1497_v28  ;;  %v1502_v30 = vsel %vm1500_vm0, %v1497_v28, %v1499_v22  ;;  %2054 = vmatprep.mubr.msk.f32.mxu1 %vm2144_vm7, %v2127_v0  ;;  %1576 = vmatprep.mubr.f32.mxu0 %v2127_v0 }
 0x141   : > { %1985 = vmatprep.subr.msk.mxu0 %vm344_vm8, %v1502_v30  ;;  %2055 = vmatmul.mubr.msk.f32.vlgmr.msra.gmra.mxu1 %vm340_vm9, %v1984_v26 }
 0x142   : > { %1986 = vmatpush1.msk.msra.mxu0 %vm344_vm8, %v1501_v29  ;;  %2057 = vmatprep.subr.mxu1 %v2127_v0 }
 0x143   : > { %v1664_v32 = vpop.permute.xlu1 %1663  ;;  %1987 = vmatmul.mubr.msk.f32.vlgmr.msra.gmra.mxu0 %vm340_vm9, %v1984_v26  ;;  %v1668_v33 = vpop.permute.xlu0 %1667  ;;  %2059 = vmatprep.mubr.msk.f32.mxu1 %vm2144_vm7, %v2127_v0 }
 0x144   : > { %v1670_v34 = vsel %vm1669_vm1, %v1664_v32, %v1666_v27  ;;  %v1671_v35 = vsel %vm1669_vm1, %v1666_v27, %v1668_v33  ;;  %2058 = vmatpush3.msk.msra.mxu1 %vm344_vm8, %v1668_v33  ;;  %1745 = vmatprep.mubr.f32.mxu0 %v2127_v0 }
 0x145   : > { %1991 = vmatprep.subr.msk.mxu0 %vm344_vm8, %v1671_v35  ;;  %2060 = vmatmul.mubr.msk.f32.vlgmr.msra.gmra.mxu1 %vm340_vm9, %v1990_v31 }
 0x146   : > { %1992 = vmatpush1.msk.msra.mxu0 %vm344_vm8, %v1670_v34 }
 0x147   : > { %1993 = vmatmul.mubr.msk.f32.vlgmr.msra.gmra.mxu0 %vm340_vm9, %v1990_v31 }
 0x150   : > { %v1829_v21 = vpop.permute.xlu0 %1828  ;;  %v1838_v27 = vpop.permute.xlu1 %1837 }
 0x1e1   : > { %v488_v36 = vpop.f32.mrf.mxu1 }
 0x1e3   : > { %v2021_v37 = vpop.f32.mrf.mxu1 }
 0x1e5   : > { %v638_v38 = vpop.f32.mrf.mxu1 }
 0x1e6   : > { %v639_v54 = vadd.f32 %v638_v38, %v488_v36 }
 0x1e7   : > { %v417_v39 = vpop.f32.mrf.mxu0  ;;  %v2026_v40 = vpop.f32.mrf.mxu1 }
 0x1e9   : > { %v419_v41 = vpop.f32.mrf.mxu0 }
 0x1eb   : > { %v567_v42 = vpop.f32.mrf.mxu0 }
 0x1ec   : > { %v568_v57 = vadd.f32 %v567_v42, %v417_v39 }
 0x1ed   : > { %v569_v43 = vpop.f32.mrf.mxu0  ;;  %v804_v44 = vpop.f32.mrf.mxu1 }
 0x1ee   : > { %v810_v58 = vadd.f32 %v804_v44, %v639_v54  ;;  %v570_v61 = vadd.f32 %v569_v43, %v419_v41 }
 0x1ef   : > { %v733_v45 = vpop.f32.mrf.mxu0  ;;  %v2031_v46 = vpop.f32.mrf.mxu1 }
 0x1f0   : > { %v808_v62 = vadd.f32 %v733_v45, %v568_v57 }
 0x1f1   : > { %v735_v0 = vpop.f32.mrf.mxu0  ;;  %v973_v47 = vpop.f32.mrf.mxu1 }
 0x1f2   : > { %v979_v63 = vadd.f32 %v973_v47, %v810_v58  ;;  %v809_v3 = vadd.f32 %v735_v0, %v570_v61 }
 0x1f3   : > { %v902_v48 = vpop.f32.mrf.mxu0  ;;  %v2036_v49 = vpop.f32.mrf.mxu1 }
 0x1f4   : > { %v977_v4 = vadd.f32 %v902_v48, %v808_v62 }
 0x1f5   : > { %v904_v50 = vpop.f32.mrf.mxu0  ;;  %v1142_v51 = vpop.f32.mrf.mxu1 }
 0x1f6   : > { %v1148_v5 = vadd.f32 %v1142_v51, %v979_v63  ;;  %v978_v8 = vadd.f32 %v904_v50, %v809_v3 }
 0x1f7   : > { %v1071_v52 = vpop.f32.mrf.mxu0  ;;  %v2041_v53 = vpop.f32.mrf.mxu1 }
 0x1f8   : > { %v1146_v9 = vadd.f32 %v1071_v52, %v977_v4 }
 0x1f9   : > { %v1073_v55 = vpop.f32.mrf.mxu0  ;;  %v1311_v56 = vpop.f32.mrf.mxu1 }
 0x1fa   : > { %v1317_v10 = vadd.f32 %v1311_v56, %v1148_v5  ;;  %v1147_v13 = vadd.f32 %v1073_v55, %v978_v8 }
 0x1fb   : > { %v1240_v59 = vpop.f32.mrf.mxu0  ;;  %v2046_v60 = vpop.f32.mrf.mxu1 }
 0x1fc   : > { %v1315_v14 = vadd.f32 %v1240_v59, %v1146_v9 }
 0x1fd   : > { %v1242_v1 = vpop.f32.mrf.mxu0  ;;  %v1480_v2 = vpop.f32.mrf.mxu1 }
 0x1fe   : > { %v1486_v15 = vadd.f32 %v1480_v2, %v1317_v10  ;;  %v1316_v18 = vadd.f32 %v1242_v1, %v1147_v13 }
 0x1ff   : > { %v1409_v6 = vpop.f32.mrf.mxu0  ;;  %v2051_v7 = vpop.f32.mrf.mxu1 }
 0x200   : > { %v1484_v19 = vadd.f32 %v1409_v6, %v1315_v14 }
 0x201   : > { %v1411_v11 = vpop.f32.mrf.mxu0  ;;  %v1649_v12 = vpop.f32.mrf.mxu1 }
 0x202   : > { %v1655_v20 = vadd.f32 %v1649_v12, %v1486_v15  ;;  %v1485_v24 = vadd.f32 %v1411_v11, %v1316_v18 }
 0x203   : > { %v1578_v16 = vpop.f32.mrf.mxu0  ;;  %v2056_v17 = vpop.f32.mrf.mxu1 }
 0x204   : > { %v1653_v25 = vadd.f32 %v1578_v16, %v1484_v19 }
 0x205   : > { %v1580_v22 = vpop.f32.mrf.mxu0  ;;  %v1818_v23 = vpop.f32.mrf.mxu1 }
 0x206   : > { %v1824_v26 = vadd.f32 %v1818_v23, %v1655_v20  ;;  %v1654_v30 = vadd.f32 %v1580_v22, %v1485_v24 }
 0x207   : > { %v1747_v28 = vpop.f32.mrf.mxu0  ;;  %v2061_v29 = vpop.f32.mrf.mxu1 }
 0x208   : > { %v1822_v31 = vadd.f32 %v1747_v28, %v1653_v25  ;;  %v1833_v32 = vmul.f32 %v1829_v21, %v1824_v26 }
 0x209   : > { %v1749_v33 = vpop.f32.mrf.mxu0 }
 0x20a   : > { %v1831_v34 = vmul.f32 %v1829_v21, %v1822_v31  ;;  %v1842_v35 = vadd.f32 %v1838_v27, %v1833_v32  ;;  %v1823_v36 = vadd.f32 %v1749_v33, %v1654_v30 }
 0x20c   : > { %v1840_v37 = vadd.f32 %v1838_v27, %v1831_v34  ;;  %v1848_v38 = vand.u32 2147483647, %v1842_v35  ;;  %v1832_v39 = vmul.f32 %v1829_v21, %v1823_v36  ;;  %v1845_v55 = vmax.f32 %v1842_v35, 0.0 }
 0x20e   : > { %v1846_v40 = vand.u32 2147483647, %v1840_v37  ;;  %v1851_v41 = vsub.f32 0.0, %v1848_v38  ;;  %v1841_v42 = vadd.f32 %v1838_v27, %v1832_v39  ;;  %v1843_v58 = vmax.f32 %v1840_v37, 0.0 }
 0x210   : > { %v1849_v43 = vsub.f32 0.0, %v1846_v40  ;;  %v1856_v44 = vmul.f32 1.442695, %v1851_v41  ;;  %v1847_v45 = vand.u32 2147483647, %v1841_v42  ;;  %v1844_v63 = vmax.f32 %v1841_v42, 0.0 }
 0x212   : > { %v1852_v46 = vmul.f32 1.442695, %v1849_v43  ;;  %2101 = vpow2.f32 %v1856_v44  ;;  %v1850_v0 = vsub.f32 0.0, %v1847_v45 }
 0x214   : > { %2103 = vpow2.f32 %v1852_v46  ;;  %v1854_v47 = vmul.f32 1.442695, %v1850_v0 }
 0x216   : > { %2105 = vpow2.f32 %v1854_v47 }
 0x21f   : > { %v2102_v48 = vpop.eup %2101 }
 0x220   : > { %v1860_v49 = vadd.f32 1.0, %v2102_v48 }
 0x221   : > { %v2104_v50 = vpop.eup %2103 }
 0x222   : > { %v1858_v51 = vadd.f32 1.0, %v2104_v50  ;;  %2107 = vlog2.f32 %v1860_v49 }
 0x223   : > { %v2106_v52 = vpop.eup %2105 }
 0x224   : > { %2109 = vlog2.f32 %v1858_v51  ;;  %v1859_v53 = vadd.f32 1.0, %v2106_v52 }
 0x226   : > { %2111 = vlog2.f32 %v1859_v53 }
 0x22f   : > { %v2108_v54 = vpop.eup %2107 }
 0x230   : > { %v1866_v56 = vmul.f32 0.6931472, %v2108_v54 }
 0x231   : > { %v2110_v57 = vpop.eup %2109 }
 0x232   : > { %v1862_v59 = vmul.f32 0.6931472, %v2110_v57  ;;  %v1869_v60 = vadd.f32 %v1866_v56, %v1845_v55 }
 0x233   : > { %v2112_v61 = vpop.eup %2111 }
 0x234   : > { %v1867_v62 = vadd.f32 %v1862_v59, %v1843_v58  ;;  %2113 = vtanh.f32 %v1869_v60  ;;  %v1864_v1 = vmul.f32 0.6931472, %v2112_v61 }
 0x236   : > { %2115 = vtanh.f32 %v1867_v62  ;;  %v1868_v2 = vadd.f32 %v1864_v1, %v1844_v63 }
 0x238   : > { %2117 = vtanh.f32 %v1868_v2 }
 0x241   : > { %v2114_v3 = vpop.eup %2113 }
 0x242   : > { %v1875_v4 = vmul.f32 %v2114_v3, %v1842_v35 }
 0x243   : > { %v2116_v5 = vpop.eup %2115 }
 0x244   : > { %v1873_v6 = vmul.f32 %v2116_v5, %v1840_v37  ;;  %1879 = vst.msk [vmem:[%s197_s22 + $0x10] sm:$0xff] %vm1878_vm2, %v1875_v4 }
 0x245   : > { %v2118_v7 = vpop.eup %2117 }
 0x246   : > { %1876 = vst [vmem:[%s197_s22] sm:$0xff] %v1873_v6  ;;  %v1874_v8 = vmul.f32 %v2118_v7, %v1841_v42 }
 0x248   : > { %1877 = vst [vmem:[%s197_s22 + $0x8] sm:$0xff] %v1874_v8 }
 0x249 PF: > { %s14_s15 = sadd.s32 1, %s2125_s15  }
 0x24a   : > { %p11_p4 = scmp.ge.s32.totalorder %s14_s15, 4  }
 0x24c   :  { %13 = sbr.rel (!%p11_p4) target bundleno = 1 (0x1), region = 74 }

</bundles_post_ra>
